<compile_context>
chip_gen: v5e
topology: v5e:2x2
jax: 0.10.0
libtpu: 0.0.40
codegen_flags: <defaults>
</compile_context>

<pallas_src>
import jax
import jax.numpy as jnp
from jax import lax
from jax.experimental import pallas as pl


# ---------------------------------------------------------------------------
# Fused Pallas kernel (factory closes over static config: heights, F)
# ---------------------------------------------------------------------------
def _make_fused_kimcnn_kernel(filter_heights, num_filters):
    n_h = len(filter_heights)

    def kernel(ids_ref, tab_ref, *rest):
        # rest = (w_col_0 .. w_col_{n_h-1}, conv_b_cat, lin_w, lin_b, out)
        w_refs = rest[:n_h]
        b_ref, lw_ref, lb_ref, o_ref = rest[n_h:]

        B, L = ids_ref.shape
        V, CE = tab_ref.shape          # CE = in_channels * embed_dim
        F = num_filters

        # ---- embedding gather as a one-hot matmul (both channels at once) --
        ids = ids_ref[...]                                          # (B, L) i32
        iota = lax.broadcasted_iota(jnp.int32, (B, L, V), 2)
        onehot = (ids[:, :, None] == iota).astype(jnp.float32)      # (B, L, V)
        x = jnp.dot(onehot.reshape(B * L, V), tab_ref[...],
                    preferred_element_type=jnp.float32)             # (B*L, C*E)
        x = x.reshape(B, L, CE)

        # ---- per filter height: im2col -> one matmul -> max over time ------
        pooled = []
        for w_ref, h in zip(w_refs, filter_heights):
            T = L - h + 1
            # (B, T, h*C*E); window rows concatenated lane-wise with
            # (dh, c, e) ordering -- matches the wrapper's weight reshape.
            xcol = jnp.concatenate(
                [x[:, dh:dh + T, :] for dh in range(h)], axis=-1)
            acc = jnp.dot(xcol.reshape(B * T, h * CE), w_ref[...],
                          preferred_element_type=jnp.float32)       # (B*T, F)
            pooled.append(jnp.max(acc.reshape(B, T, F), axis=1))    # (B, F)

        feat = jnp.concatenate(pooled, axis=-1)                     # (B, n_h*F)
        # bias + ReLU after the temporal max (equivalent; far less VPU work)
        feat = jnp.maximum(feat + b_ref[...], 0.0)

        # TODO(synk): dropout is an inference-mode identity (p ignored).
        o_ref[...] = (
            jnp.dot(feat, lw_ref[...], preferred_element_type=jnp.float32)
            + lb_ref[...]
        )

    return kernel


def _whole_array_spec(shape):
    nd = len(shape)
    return pl.BlockSpec(shape, lambda *_: (0,) * nd)


# ---------------------------------------------------------------------------
# Wrapper: host-side weight layout prep + one pallas_call
# ---------------------------------------------------------------------------
def kimcnn_forward(input_ids, params, filter_heights, num_filters):
    """input_ids: (B, L) int32 token ids.  Returns (B, num_labels) logits."""
    B, L = input_ids.shape

    emb_train = params["embed_trainable"].astype(jnp.float32)   # (V, E)
    emb_fixed = params["embed_fixed"].astype(jnp.float32)       # (V, E)
    V, E = emb_train.shape
    # Lane-dense combined embedding table: column index = c*E + e.
    tab = jnp.concatenate([emb_train, emb_fixed], axis=1)       # (V, C*E)

    # Conv weights (F, C, h, E) -> (h*C*E, F) with (dh, c, e) row ordering.
    w_cols = []
    for w in params["conv_w"]:
        F, C, h, Ew = w.shape
        w_cols.append(
            jnp.transpose(w, (2, 1, 3, 0)).reshape(h * C * Ew, F)
            .astype(jnp.float32))
    b_cat = jnp.concatenate(
        [b.reshape(1, -1) for b in params["conv_b"]], axis=1
    ).astype(jnp.float32)                                        # (1, n_h*F)

    lin_w = params["lin_w"].astype(jnp.float32)                  # (n_h*F, NL)
    lin_b = params["lin_b"].reshape(1, -1).astype(jnp.float32)   # (1, NL)
    num_labels = lin_w.shape[1]

    kernel = _make_fused_kimcnn_kernel(tuple(filter_heights), num_filters)

    inputs = [input_ids.astype(jnp.int32), tab, *w_cols, b_cat, lin_w, lin_b]
    # TODO(synk): at production scale, add a batch grid axis ("parallel") with
    # per-tile BlockSpecs + vmem_limit_bytes instead of whole-array blocks.
    return pl.pallas_call(
        kernel,
        out_shape=jax.ShapeDtypeStruct((B, num_labels), jnp.float32),
        in_specs=[_whole_array_spec(a.shape) for a in inputs],
        out_specs=_whole_array_spec((B, num_labels)),
    )(*inputs)


# ---------------------------------------------------------------------------
# Pure-JAX reference for correctness check
# ---------------------------------------------------------------------------
def kimcnn_reference(input_ids, params):
    emb_train = params["embed_trainable"][input_ids]
    emb_fixed = params["embed_fixed"][input_ids]
    x = jnp.stack([emb_train, emb_fixed], axis=1).astype(jnp.float32)
    B, C, L, E = x.shape
    outs = []
    for w, b in zip(params["conv_w"], params["conv_b"]):
        F, _, h, _ = w.shape
        T = L - h + 1
        windows = jnp.stack([x[:, :, t:t + h, :] for t in range(T)], axis=1)
        s = jnp.einsum("btche,fche->btf", windows, w) + b[0]
        outs.append(jnp.max(jax.nn.relu(s), axis=1))
    feat = jnp.concatenate(outs, axis=1)
    return feat @ params["lin_w"] + params["lin_b"][0]


# ---------------------------------------------------------------------------
# Main
# ---------------------------------------------------------------------------
if __name__ == "__main__":
    # Small, module-consistent shapes.
    VOCAB = 50
    EMBED = 32          # embeddings.shape[1]
    BATCH = 2
    SEQ_LEN = 16
    FILTER_HEIGHTS = [3, 4, 5]   # args.filter_heights = "3,4,5"
    NUM_FILTERS = 8              # args.num_filters
    NUM_LABELS = 4               # args.num_labels
    IN_CHANNELS = 2              # use_fixed_embed and use_trainable_embed

    key = jax.random.PRNGKey(0)
    keys = jax.random.split(key, 4 + 2 * len(FILTER_HEIGHTS))

    embeddings = 0.1 * jax.random.normal(keys[0], (VOCAB, EMBED), jnp.float32)

    conv_w, conv_b = [], []
    for i, h in enumerate(FILTER_HEIGHTS):
        conv_w.append(0.1 * jax.random.normal(
            keys[1 + 2 * i], (NUM_FILTERS, IN_CHANNELS, h, EMBED), jnp.float32))
        conv_b.append(0.05 * jax.random.normal(
            keys[2 + 2 * i], (1, NUM_FILTERS), jnp.float32))

    feat_dim = len(FILTER_HEIGHTS) * NUM_FILTERS
    lin_w = 0.1 * jax.random.normal(
        keys[-2], (feat_dim, NUM_LABELS), jnp.float32)   # stored as (in, out)
    lin_b = 0.05 * jax.random.normal(keys[-1], (1, NUM_LABELS), jnp.float32)

    params = {
        # Both embedding layers are initialized from the same `embeddings`
        # matrix (as in the PyTorch __init__); one is "trainable", one fixed.
        "embed_trainable": embeddings,
        "embed_fixed": embeddings,
        "conv_w": conv_w,
        "conv_b": conv_b,
        "lin_w": lin_w,
        "lin_b": lin_b,
    }

    input_ids = jax.random.randint(
        jax.random.PRNGKey(42), (BATCH, SEQ_LEN), 0, VOCAB, dtype=jnp.int32)

    logits = kimcnn_forward(input_ids, params, FILTER_HEIGHTS, NUM_FILTERS)
    jax.block_until_ready(logits)

    ref = kimcnn_reference(input_ids, params)
    assert logits.shape == (BATCH, NUM_LABELS), logits.shape
    assert jnp.allclose(logits, ref, atol=1e-4, rtol=1e-4), (
        "mismatch vs reference:\n%s\n%s" % (logits, ref))

    print("KERNEL_OK")
</pallas_src>

<mosaic_0001>
module attributes {stable_mosaic.version = 11 : i64} {
  func.func @kernel(%arg0: memref<2x16xi32, #tpu.memory_space<vmem>>, %arg1: memref<50x64xf32, #tpu.memory_space<vmem>>, %arg2: memref<192x8xf32, #tpu.memory_space<vmem>>, %arg3: memref<256x8xf32, #tpu.memory_space<vmem>>, %arg4: memref<320x8xf32, #tpu.memory_space<vmem>>, %arg5: memref<1x24xf32, #tpu.memory_space<vmem>>, %arg6: memref<24x4xf32, #tpu.memory_space<vmem>>, %arg7: memref<1x4xf32, #tpu.memory_space<vmem>>, %arg8: memref<2x4xf32, #tpu.memory_space<vmem>>) attributes {dimension_semantics = [], scalar_prefetch = 0 : i64, scratch_operands = 0 : i64, tpu.core_type = #tpu.core_type<tc>} {
    %c0 = arith.constant 0 : index
    %c0_0 = arith.constant 0 : index
    %0 = vector.load %arg0[%c0, %c0_0] : memref<2x16xi32, #tpu.memory_space<vmem>>, vector<2x16xi32>
    %1 = tpu.iota {dimensions = array<i32: 2>} : vector<2x16x50xi32>
    %2 = vector.shape_cast %0 : vector<2x16xi32> to vector<2x16x1xi32>
    %3 = vector.broadcast %2 : vector<2x16x1xi32> to vector<2x16x50xi32>
    %4 = arith.cmpi eq, %3, %1 : vector<2x16x50xi32>
    %5 = arith.extui %4 : vector<2x16x50xi1> to vector<2x16x50xi32>
    %6 = arith.sitofp %5 : vector<2x16x50xi32> to vector<2x16x50xf32>
    %7 = vector.shape_cast %6 : vector<2x16x50xf32> to vector<32x50xf32>
    %c0_1 = arith.constant 0 : index
    %c0_2 = arith.constant 0 : index
    %8 = vector.load %arg1[%c0_1, %c0_2] : memref<50x64xf32, #tpu.memory_space<vmem>>, vector<50x64xf32>
    %cst = arith.constant dense<0.000000e+00> : vector<32x64xf32>
    %9 = tpu.matmul %7, %8, %cst {dimension_numbers = #tpu.dot_dimension_numbers<[1], [0], [0], [1], [0, 0, 1, 1], [], []>} : vector<32x50xf32>, vector<50x64xf32>, vector<32x64xf32> -> vector<32x64xf32>
    %10 = vector.shape_cast %9 : vector<32x64xf32> to vector<2x16x64xf32>
    %11 = vector.extract_strided_slice %10 {offsets = [0, 0, 0], sizes = [2, 14, 64], strides = [1, 1, 1]} : vector<2x16x64xf32> to vector<2x14x64xf32>
    %12 = vector.extract_strided_slice %10 {offsets = [0, 1, 0], sizes = [2, 14, 64], strides = [1, 1, 1]} : vector<2x16x64xf32> to vector<2x14x64xf32>
    %13 = vector.extract_strided_slice %10 {offsets = [0, 2, 0], sizes = [2, 14, 64], strides = [1, 1, 1]} : vector<2x16x64xf32> to vector<2x14x64xf32>
    %14 = tpu.concatenate %11, %12, %13 in 2 : vector<2x14x64xf32>, vector<2x14x64xf32>, vector<2x14x64xf32> -> vector<2x14x192xf32>
    %15 = vector.shape_cast %14 : vector<2x14x192xf32> to vector<28x192xf32>
    %c0_3 = arith.constant 0 : index
    %c0_4 = arith.constant 0 : index
    %16 = vector.load %arg2[%c0_3, %c0_4] : memref<192x8xf32, #tpu.memory_space<vmem>>, vector<192x8xf32>
    %cst_5 = arith.constant dense<0.000000e+00> : vector<28x8xf32>
    %17 = tpu.matmul %15, %16, %cst_5 {dimension_numbers = #tpu.dot_dimension_numbers<[1], [0], [0], [1], [0, 0, 1, 1], [], []>} : vector<28x192xf32>, vector<192x8xf32>, vector<28x8xf32> -> vector<28x8xf32>
    %18 = vector.shape_cast %17 : vector<28x8xf32> to vector<2x14x8xf32>
    %cst_6 = arith.constant dense<0xFF800000> : vector<2x8xf32>
    %19 = vector.multi_reduction <maximumf>, %18, %cst_6 [1] : vector<2x14x8xf32> to vector<2x8xf32>
    %20 = vector.extract_strided_slice %10 {offsets = [0, 0, 0], sizes = [2, 13, 64], strides = [1, 1, 1]} : vector<2x16x64xf32> to vector<2x13x64xf32>
    %21 = vector.extract_strided_slice %10 {offsets = [0, 1, 0], sizes = [2, 13, 64], strides = [1, 1, 1]} : vector<2x16x64xf32> to vector<2x13x64xf32>
    %22 = vector.extract_strided_slice %10 {offsets = [0, 2, 0], sizes = [2, 13, 64], strides = [1, 1, 1]} : vector<2x16x64xf32> to vector<2x13x64xf32>
    %23 = vector.extract_strided_slice %10 {offsets = [0, 3, 0], sizes = [2, 13, 64], strides = [1, 1, 1]} : vector<2x16x64xf32> to vector<2x13x64xf32>
    %24 = tpu.concatenate %20, %21, %22, %23 in 2 : vector<2x13x64xf32>, vector<2x13x64xf32>, vector<2x13x64xf32>, vector<2x13x64xf32> -> vector<2x13x256xf32>
    %25 = vector.shape_cast %24 : vector<2x13x256xf32> to vector<26x256xf32>
    %c0_7 = arith.constant 0 : index
    %c0_8 = arith.constant 0 : index
    %26 = vector.load %arg3[%c0_7, %c0_8] : memref<256x8xf32, #tpu.memory_space<vmem>>, vector<256x8xf32>
    %cst_9 = arith.constant dense<0.000000e+00> : vector<26x8xf32>
    %27 = tpu.matmul %25, %26, %cst_9 {dimension_numbers = #tpu.dot_dimension_numbers<[1], [0], [0], [1], [0, 0, 1, 1], [], []>} : vector<26x256xf32>, vector<256x8xf32>, vector<26x8xf32> -> vector<26x8xf32>
    %28 = vector.shape_cast %27 : vector<26x8xf32> to vector<2x13x8xf32>
    %cst_10 = arith.constant dense<0xFF800000> : vector<2x8xf32>
    %29 = vector.multi_reduction <maximumf>, %28, %cst_10 [1] : vector<2x13x8xf32> to vector<2x8xf32>
    %30 = vector.extract_strided_slice %10 {offsets = [0, 0, 0], sizes = [2, 12, 64], strides = [1, 1, 1]} : vector<2x16x64xf32> to vector<2x12x64xf32>
    %31 = vector.extract_strided_slice %10 {offsets = [0, 1, 0], sizes = [2, 12, 64], strides = [1, 1, 1]} : vector<2x16x64xf32> to vector<2x12x64xf32>
    %32 = vector.extract_strided_slice %10 {offsets = [0, 2, 0], sizes = [2, 12, 64], strides = [1, 1, 1]} : vector<2x16x64xf32> to vector<2x12x64xf32>
    %33 = vector.extract_strided_slice %10 {offsets = [0, 3, 0], sizes = [2, 12, 64], strides = [1, 1, 1]} : vector<2x16x64xf32> to vector<2x12x64xf32>
    %34 = vector.extract_strided_slice %10 {offsets = [0, 4, 0], sizes = [2, 12, 64], strides = [1, 1, 1]} : vector<2x16x64xf32> to vector<2x12x64xf32>
    %35 = tpu.concatenate %30, %31, %32, %33, %34 in 2 : vector<2x12x64xf32>, vector<2x12x64xf32>, vector<2x12x64xf32>, vector<2x12x64xf32>, vector<2x12x64xf32> -> vector<2x12x320xf32>
    %36 = vector.shape_cast %35 : vector<2x12x320xf32> to vector<24x320xf32>
    %c0_11 = arith.constant 0 : index
    %c0_12 = arith.constant 0 : index
    %37 = vector.load %arg4[%c0_11, %c0_12] : memref<320x8xf32, #tpu.memory_space<vmem>>, vector<320x8xf32>
    %cst_13 = arith.constant dense<0.000000e+00> : vector<24x8xf32>
    %38 = tpu.matmul %36, %37, %cst_13 {dimension_numbers = #tpu.dot_dimension_numbers<[1], [0], [0], [1], [0, 0, 1, 1], [], []>} : vector<24x320xf32>, vector<320x8xf32>, vector<24x8xf32> -> vector<24x8xf32>
    %39 = vector.shape_cast %38 : vector<24x8xf32> to vector<2x12x8xf32>
    %cst_14 = arith.constant dense<0xFF800000> : vector<2x8xf32>
    %40 = vector.multi_reduction <maximumf>, %39, %cst_14 [1] : vector<2x12x8xf32> to vector<2x8xf32>
    %41 = tpu.concatenate %19, %29, %40 in 1 : vector<2x8xf32>, vector<2x8xf32>, vector<2x8xf32> -> vector<2x24xf32>
    %c0_15 = arith.constant 0 : index
    %c0_16 = arith.constant 0 : index
    %42 = vector.load %arg5[%c0_15, %c0_16] : memref<1x24xf32, #tpu.memory_space<vmem>>, vector<1x24xf32>
    %43 = vector.broadcast %42 : vector<1x24xf32> to vector<2x24xf32>
    %44 = arith.addf %41, %43 : vector<2x24xf32>
    %cst_17 = arith.constant 0.000000e+00 : f32
    %45 = vector.broadcast %cst_17 : f32 to vector<2x24xf32>
    %46 = arith.maximumf %44, %45 : vector<2x24xf32>
    %c0_18 = arith.constant 0 : index
    %c0_19 = arith.constant 0 : index
    %47 = vector.load %arg6[%c0_18, %c0_19] : memref<24x4xf32, #tpu.memory_space<vmem>>, vector<24x4xf32>
    %cst_20 = arith.constant dense<0.000000e+00> : vector<2x4xf32>
    %48 = tpu.matmul %46, %47, %cst_20 {dimension_numbers = #tpu.dot_dimension_numbers<[1], [0], [0], [1], [0, 0, 1, 1], [], []>} : vector<2x24xf32>, vector<24x4xf32>, vector<2x4xf32> -> vector<2x4xf32>
    %c0_21 = arith.constant 0 : index
    %c0_22 = arith.constant 0 : index
    %49 = vector.load %arg7[%c0_21, %c0_22] : memref<1x4xf32, #tpu.memory_space<vmem>>, vector<1x4xf32>
    %50 = vector.broadcast %49 : vector<1x4xf32> to vector<2x4xf32>
    %51 = arith.addf %48, %50 : vector<2x4xf32>
    %c0_23 = arith.constant 0 : index
    %c0_24 = arith.constant 0 : index
    %52 = vector.load %arg8[%c0_23, %c0_24] : memref<2x4xf32, #tpu.memory_space<vmem>>, vector<2x4xf32>
    tpu.vector_store %arg8[%c0_23, %c0_24], %51 {strides = array<i32>} : memref<2x4xf32, #tpu.memory_space<vmem>>, vector<2x4xf32>,
    return
  }
}

</mosaic_0001>

<bundles_post_ra>
// kernel: tpu_custom_call.1
= control target key start
LH: loop header
LB: loop body
LE: loop exit
PB: predicated region body
PF: predicated region fallthrough
CT: control target
= control target key end

     0   :  { %v31_v0 = vlaneseq  ;;  %vm91_vm0 = vcmask 1041408   ;;  %s1645_s0 = inlined_call_operand.vmem [shape: s32[2,16], index: 0, kind: input, shape index: {}]   ;;  %s1646_s1 = inlined_call_operand.vmem [shape: f32[50,64], index: 1, kind: input, shape index: {}]   ;;  %s1647_s2 = inlined_call_operand.vmem [shape: f32[192,8], index: 2, kind: input, shape index: {}]   ;;  %s1648_s3 = inlined_call_operand.vmem [shape: f32[256,8], index: 3, kind: input, shape index: {}]   ;;  %s1649_s4 = inlined_call_operand.vmem [shape: f32[320,8], index: 4, kind: input, shape index: {}]   ;;  %s1650_s5 = inlined_call_operand.vmem [shape: f32[1,24], index: 5, kind: input, shape index: {}]   ;;  %s1651_s6 = inlined_call_operand.vmem [shape: f32[24,4], index: 6, kind: input, shape index: {}]   ;;  %s1652_s7 = inlined_call_operand.vmem [shape: f32[1,4], index: 7, kind: input, shape index: {}]   ;;  %s1653_s8 = inlined_call_operand.hbm [shape: f32[2,4], index: 8, kind: output, shape index: {}]  }
   0x1   :  { %v77_v1 = vld [vmem:[%s1646_s1 + $0x30] sm:$0x3]  ;;  %v76_v2 = vld [vmem:[%s1646_s1 + $0x28] sm:$0xff]  ;;  %v75_v4 = vld [vmem:[%s1646_s1 + $0x20] sm:$0xff] }
   0x2   :  { %994 = vmatpush.msk.msra.mxu0 %vm91_vm0, %v77_v1  ;;  %v35_v3 = vshrl.u32 %v31_v0, 7 }
   0x4   :  { %105 = vmatpush.msra.mxu0 %v76_v2 }
   0x5   :  { %13 = vsyncpa [#allocation3], 0  ;;  %1012 = vset.pattern.permute.xlu0 %v35_v3  ;;  %1014 = vset.pattern.permute.xlu1 %v35_v3  ;;  %v74_v5 = vld [vmem:[%s1646_s1 + $0x18] sm:$0xff]  ;;  %v30_v6 = vld [vmem:[%s1645_s0] sm:$0x3]  ;;  %v42_v11 = vadd.s32 8, %v35_v3 }
   0x6   :  { %106 = vmatpush.msra.mxu0 %v75_v4  ;;  %v73_v7 = vld [vmem:[%s1646_s1 + $0x10] sm:$0xff]  ;;  %v33_v8 = vperm.slane %v30_v6, 0  ;;  %v46_v9 = vperm.slane %v30_v6, 1  ;;  %v72_v10 = vld [vmem:[%s1646_s1 + $0x8] sm:$0xff]  ;;  %v71_v12 = vld [vmem:[%s1646_s1] sm:$0xff]  ;;  %v32_v13 = vand.u32 127, %v31_v0 }
   0x7   :  { %vm78_vm1 = vcmask 408576   ;;  %v1044_v15 = vmov 0.0   ;;  %v208_v24 = vld [vmem:[%s1647_s2 + $0x78] sm:$0xff]  ;;  %v207_v25 = vld [vmem:[%s1647_s2 + $0x70] sm:$0xff]  ;;  %v206_v26 = vld [vmem:[%s1647_s2 + $0x68] sm:$0xff]  ;;  %vm382_vm6 = vcmask 1044480  }
   0x8   :  { %107 = vmatpush.msra.mxu0 %v74_v5  ;;  %258 = vmatpush.msra.mxu1 %v208_v24  ;;  %v216_v28 = vld [vmem:[%s1647_s2 + $0xb8] sm:$0xff]  ;;  %v215_v29 = vld [vmem:[%s1647_s2 + $0xb0] sm:$0xff]  ;;  %vm128_vm7 = vcmask 1046528   ;;  %v205_v33 = vld [vmem:[%s1647_s2 + $0x60] sm:$0xff]  ;;  %s1045_s11 = smov 64   ;;  %vm147_vm8 = vcmask 1045504  }
   0x9   :  { %295 = vmatpush.msra.mxu2 %v216_v28  ;;  %v204_v36 = vld [vmem:[%s1647_s2 + $0x58] sm:$0xff]  ;;  %v203_v38 = vld [vmem:[%s1647_s2 + $0x50] sm:$0xff]  ;;  %v202_v39 = vld [vmem:[%s1647_s2 + $0x48] sm:$0xff]  ;;  %vm154_vm9 = vcmask 523264   ;;  %vm168_vm10 = vcmask 1043458   ;;  %vm171_vm11 = vcmask 1045508  }
   0xa   :  { %108 = vmatpush.msra.mxu0 %v73_v7  ;;  %259 = vmatpush.msra.mxu1 %v207_v25  ;;  %v201_v41 = vld [vmem:[%s1647_s2 + $0x40] sm:$0xff]  ;;  %v200_v42 = vld [vmem:[%s1647_s2 + $0x38] sm:$0xff]  ;;  %v199_v43 = vld [vmem:[%s1647_s2 + $0x30] sm:$0xff]  ;;  %vm693_vm12 = vcmask 1043456   ;;  %vm424_vm13 = vcmask 1044484   ;;  %vm415_vm14 = vcmask 1041409  }
   0xb   :  { %296 = vmatpush.msra.mxu2 %v215_v29  ;;  %v198_v51 = vld [vmem:[%s1647_s2 + $0x28] sm:$0xff]  ;;  %v197_v53 = vld [vmem:[%s1647_s2 + $0x20] sm:$0xff]  ;;  %v196_v55 = vld [vmem:[%s1647_s2 + $0x18] sm:$0xff]  ;;  %vm418_vm15 = vcmask 1042434  }
   0xc   :  { %109 = vmatpush.msra.mxu0 %v72_v10  ;;  %260 = vmatpush.msra.mxu1 %v206_v26  ;;  %v214_v52 = vld [vmem:[%s1647_s2 + $0xa8] sm:$0xff]  ;;  %v213_v54 = vld [vmem:[%s1647_s2 + $0xa0] sm:$0xff]  ;;  %v212_v56 = vld [vmem:[%s1647_s2 + $0x98] sm:$0xff] }
   0xd   :  { %38 = vperm.xlu0 %1012, %v33_v8   ;;  %51 = vperm.xlu1 %1014, %v46_v9   ;;  %v195_v57 = vld [vmem:[%s1647_s2 + $0x10] sm:$0xff]  ;;  %v194_v59 = vld [vmem:[%s1647_s2 + $0x8] sm:$0xff]  ;;  %v193_v61 = vld [vmem:[%s1647_s2] sm:$0xff] }
   0xe   :  { %110 = vmatpush.msra.mxu0 %v71_v12  ;;  %261 = vmatpush.msra.mxu1 %v205_v33  ;;  %v211_v58 = vld [vmem:[%s1647_s2 + $0x90] sm:$0xff]  ;;  %v210_v60 = vld [vmem:[%s1647_s2 + $0x88] sm:$0xff]  ;;  %v209_v62 = vld [vmem:[%s1647_s2 + $0x80] sm:$0xff]  ;;  %s1048_s2 = smov [#allocation2]  }
   0xf   :  { %297 = vmatpush.msra.mxu2 %v214_v52  ;;  %s979_s20 = sshll.u32 %s1048_s2, 4  ;;  %s980_s20 = int_to_ptr.vmem [resolvable:$true] %s979_s20 }
  0x10   :  { %262 = vmatpush.msra.mxu1 %v204_v36 }
  0x11   :  { %298 = vmatpush.msra.mxu2 %v213_v54 }
  0x12   :  { %263 = vmatpush.msra.mxu1 %v203_v38 }
  0x13   :  { %299 = vmatpush.msra.mxu2 %v212_v56 }
  0x14   :  { %264 = vmatpush.msra.mxu1 %v202_v39 }
  0x15   :  { %1013 = vset.pattern.permute.xlu0 %v42_v11  ;;  %1015 = vset.pattern.permute.xlu1 %v42_v11 }
  0x16   :  { %265 = vmatpush.msra.mxu1 %v201_v41  ;;  %300 = vmatpush.msra.mxu2 %v211_v58 }
  0x18   :  { %266 = vmatpush.msra.mxu1 %v200_v42  ;;  %301 = vmatpush.msra.mxu2 %v210_v60 }
  0x1a   :  { %267 = vmatpush.msra.mxu1 %v199_v43  ;;  %302 = vmatpush.msra.mxu2 %v209_v62 }
  0x1c   :  { %268 = vmatpush.msra.mxu1 %v198_v51 }
  0x1d   :  { %44 = vperm.xlu0 %1013, %v33_v8   ;;  %57 = vperm.xlu1 %1015, %v46_v9  }
  0x1e   :  { %269 = vmatpush.msra.mxu1 %v197_v53 }
  0x20   :  { %270 = vmatpush.msra.mxu1 %v196_v55 }
  0x22   :  { %271 = vmatpush.msra.mxu1 %v195_v57 }
  0x24   :  { %272 = vmatpush.msra.mxu1 %v194_v59 }
  0x26   :  { %273 = vmatpush.msra.mxu1 %v193_v61 }
  0x7f   :  { %v39_v14 = vpop.permute.xlu0 %38  ;;  %v52_v18 = vpop.permute.xlu1 %51 }
  0x80   :  { %vm59_vm2 = vcmp.eq.s32.totalorder %v39_v14, %v32_v13  ;;  %vm61_vm4 = vcmp.eq.s32.totalorder %v52_v18, %v32_v13 }
  0x81   :  { %v990_v16 = vsel %vm59_vm2, 1.0, %v1044_v15  ;;  %v992_v20 = vsel %vm61_vm4, 1.0, %v1044_v15  ;;  %vm413_vm2 = vcmask 1040384   ;;  %vm675_vm4 = vcmask 61440  }
  0x82   :  { %995 = vmatmul.msk.f32.vlgmr.msra.gmra.mxu0 %vm78_vm1, %v990_v16 }
  0x8f   :  { %v45_v17 = vpop.permute.xlu0 %44  ;;  %v58_v21 = vpop.permute.xlu1 %57 }
  0x90   :  { %vm60_vm3 = vcmp.eq.s32.totalorder %v45_v17, %v32_v13  ;;  %vm62_vm5 = vcmp.eq.s32.totalorder %v58_v21, %v32_v13 }
  0x91   :  { %v991_v19 = vsel %vm60_vm3, 1.0, %v1044_v15  ;;  %v993_v22 = vsel %vm62_vm5, 1.0, %v1044_v15  ;;  %vm430_vm3 = vcmask 1046534   ;;  %vm358_vm5 = vcmask 64512  }
  0x92   :  { %996 = vmatmul.msk.f32.gmra.mxu0 %vm78_vm1, %v991_v19 }
  0x9a   :  { %997 = vmatmul.msk.f32.gmra.mxu0 %vm78_vm1, %v992_v20 }
  0xa2   :  { %998 = vmatmul.msk.f32.gmra.mxu0 %vm78_vm1, %v993_v22  ;;  %vm427_vm1 = vcmask 1045509  }
  0xff   :  { %v1123_v23 = vpop.f32.mrf.mxu0 }
 0x100   :  { %v383_v30 = vrot.slane %v1123_v23, 3  ;;  %v129_v34 = vrot.slane %v1123_v23, 1  ;;  %v148_v0 = vrot.slane %v1123_v23, 2 }
 0x10f   :  { %v1134_v27 = vpop.f32.mrf.mxu0 }
 0x110   :  { %v384_v31 = vrot.slane %v1134_v27, 3  ;;  %v130_v32 = vrot.slane %v1134_v27, 1  ;;  %v1216_v63 = vrot.slane %v1134_v27, 2 }
 0x112   :  { %v385_v35 = vsel %vm382_vm6, %v383_v30, %v384_v31  ;;  %v131_v37 = vsel %vm128_vm7, %v129_v34, %v130_v32  ;;  %v150_v1 = vsel %vm147_vm8, %v148_v0, %v1216_v63  ;;  %v164_v12 = vrot.slane %v1216_v63, 6 }
 0x113   :  { %389 = vrot.lane.b32.xlu0 %v385_v35, %s1045_s11  ;;  %135 = vrot.lane.b32.xlu2 %v131_v37, %s1045_s11  ;;  %v163_v2 = vrot.slane %v150_v1, 6 }
 0x117   :  { %v1160_v40 = vpop.f32.mrf.mxu0 }
 0x118   :  { %v132_v47 = vrot.slane %v1160_v40, 1  ;;  %v386_v49 = vrot.slane %v1160_v40, 3  ;;  %v151_v34 = vrot.slane %v1160_v40, 2 }
 0x11b   :  { %137 = vrot.lane.b32.xlu2 %v130_v32, %s1045_s11 }
 0x11f   :  { %v1171_v44 = vpop.f32.mrf.mxu0 }
 0x120   :  { %v387_v45 = vrot.slane %v1171_v44, 3  ;;  %v133_v46 = vrot.slane %v1171_v44, 1  ;;  %v152_v20 = vrot.slane %v1171_v44, 2 }
 0x122   :  { %395 = vrot.lane.b32.xlu0 %v387_v45, %s1045_s11  ;;  %v134_v48 = vsel %vm128_vm7, %v132_v47, %v133_v46  ;;  %v388_v50 = vsel %vm382_vm6, %v386_v49, %v387_v45  ;;  %v166_v25 = vrot.slane %v152_v20, 6  ;;  %v153_v35 = vsel %vm147_vm8, %v151_v34, %v152_v20 }
 0x123   :  { %139 = vrot.lane.b32.xlu1 %v134_v48, %s1045_s11  ;;  %141 = vrot.lane.b32.xlu2 %v133_v46, %s1045_s11  ;;  %v165_v37 = vrot.slane %v153_v35, 6  ;;  %vm898_vm6 = vcmask 60416  }
 0x12b   :  { %391 = vrot.lane.b32.xlu1 %v384_v31, %s1045_s11  ;;  %393 = vrot.lane.b32.xlu2 %v388_v50, %s1045_s11 }
 0x16d   :  { %v136_v3 = vpop.permute.xlu2 %135 }
 0x16e   :  { %v1223_v4 = vsel %vm154_vm9, %v1123_v23, %v136_v3 }
 0x16f   :  { %v167_v5 = vsel %vm91_vm0, %v1223_v4, %v163_v2  ;;  %v174_v6 = vsel %vm147_vm8, %v163_v2, %v1223_v4  ;;  %v169_v7 = vsel %vm168_vm10, %v1223_v4, %v163_v2  ;;  %v172_v8 = vsel %vm171_vm11, %v1223_v4, %v163_v2 }
 0x170   :  { %v175_v9 = vrot.slane %v174_v6, 6  ;;  %217 = vst [vmem:[#allocation1] ss:$4 sm:$0xff] %v167_v5  ;;  %v170_v10 = vrot.slane %v169_v7, 2  ;;  %v173_v11 = vrot.slane %v172_v8, 4 }
 0x172   :  { %223 = vst [vmem:[#allocation1 + $0x3] ss:$4 sm:$0xff] %v175_v9 }
 0x173   :  { %219 = vst [vmem:[#allocation1 + $0x1] ss:$4 sm:$0xff] %v170_v10 }
 0x174   :  { %221 = vst [vmem:[#allocation1 + $0x2] ss:$4 sm:$0xff] %v173_v11 }
 0x175   :  { %v138_v13 = vpop.permute.xlu2 %137 }
 0x176   :  { %v1236_v14 = vsel %vm154_vm9, %v1134_v27, %v138_v13 }
 0x177   :  { %v176_v15 = vsel %vm91_vm0, %v1236_v14, %v164_v12  ;;  %v177_v16 = vsel %vm168_vm10, %v1236_v14, %v164_v12  ;;  %v179_v17 = vsel %vm171_vm11, %v1236_v14, %v164_v12 }
 0x178   :  { %v178_v18 = vrot.slane %v177_v16, 2  ;;  %v180_v19 = vrot.slane %v179_v17, 4  ;;  %225 = vst [vmem:[#allocation1 + $0x20] ss:$4 sm:$0xff] %v176_v15  ;;  %v483_v15 = vld [vmem:[%s1648_s3 + $0x78] sm:$0xff]  ;;  %v482_v17 = vld [vmem:[%s1648_s3 + $0x70] sm:$0xff] }
 0x179   :  { %v499_v16 = vld [vmem:[%s1648_s3 + $0xf8] sm:$0xff]  ;;  %549 = vmatpush.msra.mxu3 %v483_v15  ;;  %v470_v15 = vld [vmem:[%s1648_s3 + $0x10] sm:$0xff] }
 0x17a   :  { %227 = vst [vmem:[#allocation1 + $0x21] ss:$4 sm:$0xff] %v178_v18  ;;  %578 = vmatpush.msrb.mxu0 %v499_v16  ;;  %v498_v18 = vld [vmem:[%s1648_s3 + $0xf0] sm:$0xff] }
 0x17b   :  { %v232_v21 = vld.sshfl [vmem:[#allocation1] sm:$0xff pattern:$0x73625140]  ;;  %v233_v22 = vld.sshfl [vmem:[#allocation1 + $0x8] sm:$0xff pattern:$0x73625140]  ;;  %550 = vmatpush.msra.mxu3 %v482_v17 }
 0x17c   :  { %229 = vst [vmem:[#allocation1 + $0x22] ss:$4 sm:$0xff] %v180_v19  ;;  %274 = vmatmul.f32.vlgmr.msra.gmra.mxu1 %v232_v21  ;;  %999 = vmatmul.msk.f32.vlgmr.msra.gmra.mxu2 %vm154_vm9, %v233_v22  ;;  %v481_v19 = vld [vmem:[%s1648_s3 + $0x68] sm:$0xff]  ;;  %v480_v21 = vld [vmem:[%s1648_s3 + $0x60] sm:$0xff]  ;;  %v486_v16 = vld [vmem:[%s1648_s3 + $0x90] sm:$0xff] }
 0x17d   :  { %v142_v24 = vpop.permute.xlu2 %141  ;;  %579 = vmatpush.msrb.mxu0 %v498_v18  ;;  %551 = vmatpush.msra.mxu3 %v481_v19  ;;  %v496_v22 = vld [vmem:[%s1648_s3 + $0xe0] sm:$0xff]  ;;  %v469_v18 = vld [vmem:[%s1648_s3 + $0x8] sm:$0xff] }
 0x17e   :  { %v1248_v26 = vsel %vm154_vm9, %v1171_v44, %v142_v24  ;;  %v479_v24 = vld [vmem:[%s1648_s3 + $0x58] sm:$0xff]  ;;  %v485_v19 = vld [vmem:[%s1648_s3 + $0x88] sm:$0xff] }
 0x17f   :  { %v188_v28 = vsel %vm91_vm0, %v1248_v26, %v166_v25  ;;  %v189_v53 = vsel %vm168_vm10, %v1248_v26, %v166_v25  ;;  %v191_v54 = vsel %vm171_vm11, %v1248_v26, %v166_v25  ;;  %552 = vmatpush.msra.mxu3 %v480_v21  ;;  %v495_v25 = vld [vmem:[%s1648_s3 + $0xd8] sm:$0xff]  ;;  %v484_v21 = vld [vmem:[%s1648_s3 + $0x80] sm:$0xff] }
 0x180   :  { %239 = vst [vmem:[#allocation1 + $0x3] ss:$4 sm:$0xff] %v188_v28  ;;  %v190_v58 = vrot.slane %v189_v53, 2  ;;  %v192_v59 = vrot.slane %v191_v54, 4  ;;  %v475_v53 = vld [vmem:[%s1648_s3 + $0x38] sm:$0xff] }
 0x181   :  { %553 = vmatpush.msra.mxu3 %v479_v24  ;;  %v491_v54 = vld [vmem:[%s1648_s3 + $0xb8] sm:$0xff] }
 0x185   :  { %v390_v29 = vpop.permute.xlu0 %389  ;;  %v394_v41 = vpop.permute.xlu2 %393 }
 0x186   :  { %v1253_v30 = vsel %vm154_vm9, %v150_v1, %v390_v29  ;;  %v1283_v49 = vsel %vm154_vm9, %v153_v35, %v394_v41 }
 0x187   :  { %v700_v31 = vrot.slane %v1253_v30, 4  ;;  %v702_v56 = vrot.slane %v1283_v49, 4 }
 0x189   :  { %v1258_v32 = vsel %vm693_vm12, %v1223_v4, %v700_v31  ;;  %v1262_v33 = vsel %vm693_vm12, %v700_v31, %v1223_v4 }
 0x194   :  { %v396_v36 = vpop.permute.xlu0 %395 }
 0x195   :  { %v1267_v38 = vsel %vm154_vm9, %v152_v20, %v396_v36  ;;  %v140_v39 = vpop.permute.xlu1 %139  ;;  %v497_v20 = vld [vmem:[%s1648_s3 + $0xe8] sm:$0xff] }
 0x196   :  { %v703_v42 = vrot.slane %v1267_v38, 4  ;;  %v1272_v43 = vsel %vm154_vm9, %v1160_v40, %v140_v39  ;;  %580 = vmatpush.msrb.mxu0 %v497_v20  ;;  %v494_v39 = vld [vmem:[%s1648_s3 + $0xd0] sm:$0xff]  ;;  %v468_v20 = vld [vmem:[%s1648_s3] sm:$0xff] }
 0x197   :  { %v181_v45 = vsel %vm91_vm0, %v1272_v43, %v165_v37  ;;  %v182_v46 = vsel %vm168_vm10, %v1272_v43, %v165_v37  ;;  %v184_v47 = vsel %vm171_vm11, %v1272_v43, %v165_v37  ;;  %v186_v48 = vsel %vm147_vm8, %v165_v37, %v1272_v43  ;;  %v478_v37 = vld [vmem:[%s1648_s3 + $0x50] sm:$0xff] }
 0x198   :  { %231 = vst [vmem:[#allocation1 + $0x23] ss:$4 sm:$0xff] %v181_v45  ;;  %v1287_v50 = vsel %vm693_vm12, %v1248_v26, %v703_v42  ;;  %v183_v51 = vrot.slane %v182_v46, 2  ;;  %v185_v52 = vrot.slane %v184_v47, 4  ;;  %v187_v55 = vrot.slane %v186_v48, 6  ;;  %581 = vmatpush.msrb.mxu0 %v496_v22  ;;  %554 = vmatpush.msra.mxu3 %v478_v37  ;;  %v477_v45 = vld [vmem:[%s1648_s3 + $0x48] sm:$0xff] }
 0x199   :  { %v1296_v60 = vsel %vm693_vm12, %v1272_v43, %v702_v56  ;;  %v1300_v0 = vsel %vm693_vm12, %v702_v56, %v1272_v43  ;;  %v493_v46 = vld [vmem:[%s1648_s3 + $0xc8] sm:$0xff]  ;;  %v476_v48 = vld [vmem:[%s1648_s3 + $0x40] sm:$0xff]  ;;  %vm421_vm0 = vcmask 1043459   ;;  %vm933_vm8 = vcmask 130048  }
 0x19a   :  { %236 = vst [vmem:[#allocation1] ss:$4 sm:$0xff] %v183_v51  ;;  %582 = vmatpush.msrb.mxu0 %v495_v25  ;;  %555 = vmatpush.msra.mxu3 %v477_v45  ;;  %v492_v51 = vld [vmem:[%s1648_s3 + $0xc0] sm:$0xff]  ;;  %vm972_vm10 = vcmask 25600  }
 0x19b   :  { %237 = vst [vmem:[#allocation1 + $0x1] ss:$4 sm:$0xff] %v185_v52 }
 0x19c   :  { %238 = vst [vmem:[#allocation1 + $0x2] ss:$4 sm:$0xff] %v187_v55  ;;  %583 = vmatpush.msrb.mxu0 %v494_v39  ;;  %556 = vmatpush.msra.mxu3 %v476_v48 }
 0x19d   :  { %v392_v57 = vpop.permute.xlu1 %391 }
 0x19e   :  { %v1304_v1 = vsel %vm154_vm9, %v1216_v63, %v392_v57  ;;  %584 = vmatpush.msrb.mxu0 %v493_v46  ;;  %557 = vmatpush.msra.mxu3 %v475_v53 }
 0x19f   :  { %v234_v61 = vld.sshfl [vmem:[#allocation1 + $0x20] sm:$0xff pattern:$0x73625140]  ;;  %v235_v62 = vld.sshfl [vmem:[#allocation1 + $0x28] sm:$0xff pattern:$0x73625140] }
 0x1a0   :  { %240 = vst [vmem:[#allocation1 + $0x20] ss:$4 sm:$0xff] %v190_v58  ;;  %v701_v2 = vrot.slane %v1304_v1, 4  ;;  %277 = vmatmul.f32.gmra.mxu1 %v234_v61  ;;  %1000 = vmatmul.msk.f32.gmra.mxu2 %vm154_vm9, %v235_v62  ;;  %v474_v58 = vld [vmem:[%s1648_s3 + $0x30] sm:$0xff]  ;;  %v409_v61 = vrot.slane %v1253_v30, 7 }
 0x1a1   :  { %241 = vst [vmem:[#allocation1 + $0x21] ss:$4 sm:$0xff] %v192_v59  ;;  %585 = vmatpush.msrb.mxu0 %v492_v51  ;;  %v490_v59 = vld [vmem:[%s1648_s3 + $0xb0] sm:$0xff]  ;;  %558 = vmatpush.msra.mxu3 %v474_v58 }
 0x1a2   :  { %v1310_v3 = vsel %vm693_vm12, %v1236_v14, %v701_v2  ;;  %v473_v2 = vld [vmem:[%s1648_s3 + $0x28] sm:$0xff]  ;;  %v416_v22 = vsel %vm415_vm14, %v1223_v4, %v409_v61  ;;  %v419_v24 = vsel %vm418_vm15, %v1223_v4, %v409_v61  ;;  %v422_v25 = vsel %vm421_vm0, %v1223_v4, %v409_v61 }
 0x1a3   :  { %v242_v5 = vld.sshfl [vmem:[#allocation1] sm:$0xff pattern:$0x73625140]  ;;  %v243_v6 = vld.sshfl [vmem:[#allocation1 + $0x8] sm:$0xff pattern:$0x73625140]  ;;  %586 = vmatpush.msrb.mxu0 %v491_v54  ;;  %559 = vmatpush.msra.mxu3 %v473_v2  ;;  %v433_v37 = vsel %vm128_vm7, %v409_v61, %v1223_v4 }
 0x1a4   :  { %v423_v39 = vrot.slane %v422_v25, 3  ;;  %v434_v46 = vrot.slane %v433_v37, 7  ;;  %v729_v37 = vld [vmem:[%s1649_s4 + $0x78] sm:$0xff] }
 0x1a5   :  { %587 = vmatpush.msrb.mxu0 %v490_v59  ;;  %794 = vmatpush.msrb.mxu2 %v729_v37 }
 0x1a8   :  { %280 = vmatmul.f32.gmra.mxu1 %v242_v5  ;;  %1001 = vmatmul.msk.f32.gmra.mxu2 %vm154_vm9, %v243_v6  ;;  %v244_v7 = vld.sshfl [vmem:[#allocation1 + $0x20] sm:$0xff pattern:$0x73625140]  ;;  %v245_v8 = vld.sshfl [vmem:[#allocation1 + $0x28] sm:$0xff pattern:$0x73625140] }
 0x1a9   :  { %v489_v5 = vld [vmem:[%s1648_s3 + $0xa8] sm:$0xff] }
 0x1aa   :  { %588 = vmatpush.msrb.mxu0 %v489_v5 }
 0x1b0   :  { %283 = vmatmul.f32.gmra.mxu1 %v244_v7  ;;  %1002 = vmatmul.msk.f32.gmra.mxu2 %vm154_vm9, %v245_v8  ;;  %v472_v7 = vld [vmem:[%s1648_s3 + $0x20] sm:$0xff] }
 0x1b1   :  { %v488_v8 = vld [vmem:[%s1648_s3 + $0xa0] sm:$0xff]  ;;  %560 = vmatpush.msra.mxu3 %v472_v7  ;;  %v412_v7 = vrot.slane %v1267_v38, 7 }
 0x1b2   :  { %589 = vmatpush.msrb.mxu0 %v488_v8 }
 0x1b3   :  { %v460_v38 = vsel %vm415_vm14, %v1248_v26, %v412_v7 }
 0x1f9   :  { %v275_v63 = vpop.f32.mrf.mxu1 }
 0x1ff   :  { %v304_v9 = vpop.f32.mrf.mxu2 }
 0x200   :  { %v305_v10 = vadd.f32 %v304_v9, %v275_v63  ;;  %v425_v63 = vsel %vm424_vm13, %v1223_v4, %v409_v61 }
 0x202   :  { %v320_v11 = vrot.slane %v305_v10, 2  ;;  %v321_v12 = vrot.slane %v305_v10, 4  ;;  %v322_v13 = vrot.slane %v305_v10, 6  ;;  %330 = vst [vmem:[#allocation1] ss:$4 sm:$0xff] %v305_v10  ;;  %v471_v10 = vld [vmem:[%s1648_s3 + $0x18] sm:$0xff] }
 0x203   :  { %561 = vmatpush.msra.mxu3 %v471_v10 }
 0x204   :  { %332 = vst [vmem:[#allocation1 + $0x1] ss:$4 sm:$0xff] %v320_v11  ;;  %v487_v11 = vld [vmem:[%s1648_s3 + $0x98] sm:$0xff] }
 0x205   :  { %334 = vst [vmem:[#allocation1 + $0x2] ss:$4 sm:$0xff] %v321_v12  ;;  %590 = vmatpush.msrb.mxu0 %v487_v11  ;;  %562 = vmatpush.msra.mxu3 %v470_v15 }
 0x206   :  { %336 = vst [vmem:[#allocation1 + $0x3] ss:$4 sm:$0xff] %v322_v13  ;;  %v426_v13 = vrot.slane %v425_v63, 4 }
 0x207   :  { %591 = vmatpush.msrb.mxu0 %v486_v16  ;;  %563 = vmatpush.msra.mxu3 %v469_v18  ;;  %v462_v18 = vsel %vm418_vm15, %v1248_v26, %v412_v7 }
 0x209   :  { %592 = vmatpush.msrb.mxu0 %v485_v19  ;;  %564 = vmatpush.msra.mxu3 %v468_v20  ;;  %v461_v20 = vrot.slane %v460_v38, 1  ;;  %v748_v38 = vld [vmem:[%s1649_s4 + $0x110] sm:$0xff] }
 0x20b   :  { %593 = vmatpush.msrb.mxu0 %v484_v21  ;;  %v463_v21 = vrot.slane %v462_v18, 2  ;;  %v747_v18 = vld [vmem:[%s1649_s4 + $0x108] sm:$0xff] }
 0x20d   :  { %v1350_v41 = vld.sshfl [vmem:[#allocation1] sm:$0xff pattern:$0x73625140] }
 0x21d   :  { %v278_v28 = vpop.f32.mrf.mxu1 }
 0x223   :  { %v307_v29 = vpop.f32.mrf.mxu2 }
 0x224   :  { %v308_v31 = vadd.f32 %v307_v29, %v278_v28  ;;  %v428_v28 = vsel %vm427_vm1, %v1223_v4, %v409_v61  ;;  %v414_v29 = vsel %vm413_vm2, %v1223_v4, %v409_v61 }
 0x225   :  { %v281_v42 = vpop.f32.mrf.mxu1 }
 0x226   :  { %v323_v34 = vrot.slane %v308_v31, 2  ;;  %v324_v35 = vrot.slane %v308_v31, 4  ;;  %v325_v36 = vrot.slane %v308_v31, 6  ;;  %338 = vst [vmem:[#allocation1 + $0x20] ss:$4 sm:$0xff] %v308_v31  ;;  %v417_v31 = vrot.slane %v416_v22, 1 }
 0x227   :  { %v464_v22 = vsel %vm421_vm0, %v1248_v26, %v412_v7 }
 0x228   :  { %340 = vst [vmem:[#allocation1 + $0x21] ss:$4 sm:$0xff] %v323_v34  ;;  %v465_v25 = vrot.slane %v464_v22, 3  ;;  %v718_v22 = vld [vmem:[%s1649_s4 + $0x20] sm:$0xff] }
 0x229   :  { %342 = vst [vmem:[#allocation1 + $0x22] ss:$4 sm:$0xff] %v324_v35  ;;  %v431_v35 = vsel %vm430_vm3, %v1223_v4, %v409_v61 }
 0x22a   :  { %345 = vst [vmem:[#allocation1] ss:$4 sm:$0xff] %v325_v36  ;;  %v420_v36 = vrot.slane %v419_v24, 2  ;;  %v432_v45 = vrot.slane %v431_v35, 6  ;;  %v466_v24 = vsel %vm424_vm13, %v1248_v26, %v412_v7 }
 0x22b   :  { %v310_v47 = vpop.f32.mrf.mxu2 }
 0x22c   :  { %v311_v52 = vadd.f32 %v310_v47, %v281_v42  ;;  %v429_v42 = vrot.slane %v428_v28, 5  ;;  %v410_v47 = vrot.slane %v1304_v1, 7  ;;  %v467_v28 = vrot.slane %v466_v24, 4  ;;  %v746_v24 = vld [vmem:[%s1649_s4 + $0x100] sm:$0xff] }
 0x22d   :  { %v284_v6 = vpop.f32.mrf.mxu1 }
 0x22e   :  { %v326_v55 = vrot.slane %v311_v52, 2  ;;  %v327_v56 = vrot.slane %v311_v52, 4  ;;  %v328_v57 = vrot.slane %v311_v52, 6  ;;  %346 = vst [vmem:[#allocation1 + $0x1] ss:$4 sm:$0xff] %v311_v52  ;;  %v436_v48 = vsel %vm415_vm14, %v1236_v14, %v410_v47 }
 0x22f   :  { %v438_v51 = vsel %vm418_vm15, %v1236_v14, %v410_v47  ;;  %v440_v4 = vsel %vm421_vm0, %v1236_v14, %v410_v47  ;;  %v411_v52 = vrot.slane %v1283_v49, 7  ;;  %v435_v53 = vsel %vm413_vm2, %v1236_v14, %v410_v47 }
 0x230   :  { %v1377_v62 = vld.sshfl [vmem:[#allocation1 + $0x20] sm:$0xff pattern:$0x73625140]  ;;  %347 = vst [vmem:[#allocation1 + $0x2] ss:$4 sm:$0xff] %v326_v55  ;;  %v437_v54 = vrot.slane %v436_v48, 1  ;;  %v442_v55 = vsel %vm424_vm13, %v1236_v14, %v410_v47 }
 0x231   :  { %348 = vst [vmem:[#allocation1 + $0x3] ss:$4 sm:$0xff] %v327_v56  ;;  %v445_v58 = vsel %vm415_vm14, %v1272_v43, %v411_v52  ;;  %v441_v59 = vrot.slane %v440_v4, 3  ;;  %v447_v49 = vsel %vm418_vm15, %v1272_v43, %v411_v52  ;;  %v443_v61 = vrot.slane %v442_v55, 4  ;;  %v727_v48 = vld [vmem:[%s1649_s4 + $0x68] sm:$0xff] }
 0x232   :  { %349 = vst [vmem:[#allocation1 + $0x20] ss:$4 sm:$0xff] %v328_v57  ;;  %v439_v57 = vrot.slane %v438_v51, 2  ;;  %v444_v14 = vsel %vm413_vm2, %v1272_v43, %v411_v52  ;;  %v446_v2 = vrot.slane %v445_v58, 1  ;;  %v448_v5 = vrot.slane %v447_v49, 2  ;;  %v743_v51 = vld [vmem:[%s1649_s4 + $0xe8] sm:$0xff] }
 0x233   :  { %v313_v30 = vpop.f32.mrf.mxu2  ;;  %v453_v8 = vsel %vm427_vm1, %v1272_v43, %v411_v52  ;;  %v457_v11 = vsel %vm128_vm7, %v411_v52, %v1272_v43  ;;  %v725_v58 = vld [vmem:[%s1649_s4 + $0x58] sm:$0xff]  ;;  %v724_v49 = vld [vmem:[%s1649_s4 + $0x50] sm:$0xff]  ;;  %vm360_vm7 = vcmask 62464  }
 0x234   :  { %v314_v9 = vadd.f32 %v313_v30, %v284_v6  ;;  %v449_v6 = vsel %vm421_vm0, %v1272_v43, %v411_v52  ;;  %v451_v30 = vsel %vm424_vm13, %v1272_v43, %v411_v52  ;;  %v454_v15 = vrot.slane %v453_v8, 5  ;;  %v722_v8 = vld [vmem:[%s1649_s4 + $0x40] sm:$0xff] }
 0x235   :  { %v450_v63 = vrot.slane %v449_v6, 3  ;;  %v452_v10 = vrot.slane %v451_v30, 4  ;;  %v458_v19 = vrot.slane %v457_v11, 7  ;;  %v723_v30 = vld [vmem:[%s1649_s4 + $0x48] sm:$0xff]  ;;  %v737_v11 = vld [vmem:[%s1649_s4 + $0xb8] sm:$0xff] }
 0x236   :  { %v329_v12 = vrot.slane %v314_v9, 2  ;;  %350 = vst [vmem:[#allocation1 + $0x21] ss:$4 sm:$0xff] %v314_v9  ;;  %v455_v9 = vsel %vm430_vm3, %v1272_v43, %v411_v52  ;;  %v459_v43 = vsel %vm413_vm2, %v1248_v26, %v412_v7  ;;  %v745_v26 = vld [vmem:[%s1649_s4 + $0xf8] sm:$0xff]  ;;  %v726_v52 = vld [vmem:[%s1649_s4 + $0x60] sm:$0xff]  ;;  %v739_v7 = vld [vmem:[%s1649_s4 + $0xc8] sm:$0xff] }
 0x237   :  { %v456_v16 = vrot.slane %v455_v9, 6  ;;  %820 = vmatpush.msrb.mxu1 %v745_v26  ;;  %v738_v9 = vld [vmem:[%s1649_s4 + $0xc0] sm:$0xff]  ;;  %v733_v26 = vld [vmem:[%s1649_s4 + $0x98] sm:$0xff] }
 0x238   :  { %v1405_v17 = vld.sshfl [vmem:[#allocation1] sm:$0xff pattern:$0x73625140]  ;;  %351 = vst [vmem:[#allocation1 + $0x22] ss:$4 sm:$0xff] %v329_v12 }
 0x239   :  { %508 = vst [vmem:[#allocation1 + $0x4] ss:$9 sm:$0xff] %v426_v13 }
 0x23f   :  { %v1429_v34 = vld.sshfl [vmem:[#allocation1 + $0x20] sm:$0xff pattern:$0x73625140] }
 0x240   :  { %500 = vst [vmem:[#allocation1] ss:$9 sm:$0xff] %v414_v29 }
 0x241   :  { %502 = vst [vmem:[#allocation1 + $0x1] ss:$9 sm:$0xff] %v417_v31 }
 0x242   :  { %504 = vst [vmem:[#allocation1 + $0x2] ss:$9 sm:$0xff] %v420_v36 }
 0x243   :  { %506 = vst [vmem:[#allocation1 + $0x3] ss:$9 sm:$0xff] %v423_v39  ;;  %v728_v39 = vld [vmem:[%s1649_s4 + $0x70] sm:$0xff] }
 0x244   :  { %510 = vst [vmem:[#allocation1 + $0x5] ss:$9 sm:$0xff] %v429_v42  ;;  %v753_v42 = vld [vmem:[%s1649_s4 + $0x138] sm:$0xff]  ;;  %795 = vmatpush.msrb.mxu2 %v728_v39 }
 0x245   :  { %512 = vst [vmem:[#allocation1 + $0x6] ss:$9 sm:$0xff] %v432_v45  ;;  %854 = vmatpush.msrb.mxu3 %v753_v42  ;;  %v744_v45 = vld [vmem:[%s1649_s4 + $0xf0] sm:$0xff] }
 0x246   :  { %514 = vst [vmem:[#allocation1 + $0x7] ss:$9 sm:$0xff] %v434_v46  ;;  %821 = vmatpush.msrb.mxu1 %v744_v45  ;;  %796 = vmatpush.msrb.mxu2 %v727_v48  ;;  %v716_v42 = vld [vmem:[%s1649_s4 + $0x10] sm:$0xff] }
 0x247   :  { %v732_v45 = vld [vmem:[%s1649_s4 + $0x90] sm:$0xff] }
 0x248   :  { %822 = vmatpush.msrb.mxu1 %v743_v51  ;;  %797 = vmatpush.msrb.mxu2 %v726_v52  ;;  %v731_v52 = vld [vmem:[%s1649_s4 + $0x88] sm:$0xff] }
 0x24a   :  { %798 = vmatpush.msrb.mxu2 %v725_v58 }
 0x24c   :  { %799 = vmatpush.msrb.mxu2 %v724_v49 }
 0x24d   :  { %v515_v1 = vld [vmem:[#allocation1] sm:$0xff]  ;;  %v516_v56 = vld [vmem:[#allocation1 + $0x9] sm:$0xff] }
 0x24e   :  { %517 = vst [vmem:[#allocation1] ss:$9 sm:$0xff] %v435_v53  ;;  %565 = vmatmul.f32.vlgmr.msra.gmra.mxu3 %v515_v1  ;;  %594 = vmatmul.f32.vlgmr.msrb.gmra.mxu0 %v516_v56  ;;  %v752_v53 = vld [vmem:[%s1649_s4 + $0x130] sm:$0xff] }
 0x24f   :  { %518 = vst [vmem:[#allocation1 + $0x1] ss:$9 sm:$0xff] %v437_v54  ;;  %v742_v54 = vld [vmem:[%s1649_s4 + $0xe0] sm:$0xff]  ;;  %855 = vmatpush.msrb.mxu3 %v752_v53  ;;  %800 = vmatpush.msrb.mxu2 %v723_v30  ;;  %v694_v30 = vrot.slane %v1123_v23, 4 }
 0x250   :  { %519 = vst [vmem:[#allocation1 + $0x2] ss:$9 sm:$0xff] %v439_v57  ;;  %823 = vmatpush.msrb.mxu1 %v742_v54 }
 0x251   :  { %520 = vst [vmem:[#allocation1 + $0x3] ss:$9 sm:$0xff] %v441_v59  ;;  %v741_v59 = vld [vmem:[%s1649_s4 + $0xd8] sm:$0xff]  ;;  %801 = vmatpush.msrb.mxu2 %v722_v8 }
 0x252   :  { %521 = vst [vmem:[#allocation1 + $0x4] ss:$9 sm:$0xff] %v443_v61  ;;  %824 = vmatpush.msrb.mxu1 %v741_v59 }
 0x253   :  { %522 = vst [vmem:[#allocation1 + $0x5] ss:$9 sm:$0xff] %v444_v14  ;;  %v751_v14 = vld [vmem:[%s1649_s4 + $0x128] sm:$0xff] }
 0x254   :  { %523 = vst [vmem:[#allocation1 + $0x6] ss:$9 sm:$0xff] %v446_v2  ;;  %856 = vmatpush.msrb.mxu3 %v751_v14 }
 0x255   :  { %524 = vst [vmem:[#allocation1 + $0x7] ss:$9 sm:$0xff] %v448_v5  ;;  %v740_v5 = vld [vmem:[%s1649_s4 + $0xd0] sm:$0xff] }
 0x256   :  { %825 = vmatpush.msrb.mxu1 %v740_v5 }
 0x258   :  { %826 = vmatpush.msrb.mxu1 %v739_v7 }
 0x25a   :  { %827 = vmatpush.msrb.mxu1 %v738_v9 }
 0x25c   :  { %v525_v12 = vld [vmem:[#allocation1] sm:$0xff]  ;;  %v526_v13 = vld [vmem:[#allocation1 + $0x9] sm:$0xff]  ;;  %828 = vmatpush.msrb.mxu1 %v737_v11 }
 0x25d   :  { %527 = vst [vmem:[#allocation1] ss:$9 sm:$0xff] %v450_v63  ;;  %568 = vmatmul.f32.gmra.mxu3 %v525_v12  ;;  %597 = vmatmul.f32.gmra.mxu0 %v526_v13  ;;  %v750_v63 = vld [vmem:[%s1649_s4 + $0x120] sm:$0xff]  ;;  %v720_v12 = vld [vmem:[%s1649_s4 + $0x30] sm:$0xff]  ;;  %v749_v13 = vld [vmem:[%s1649_s4 + $0x118] sm:$0xff] }
 0x25e   :  { %528 = vst [vmem:[#allocation1 + $0x1] ss:$9 sm:$0xff] %v452_v10  ;;  %857 = vmatpush.msrb.mxu3 %v750_v63  ;;  %v721_v10 = vld [vmem:[%s1649_s4 + $0x38] sm:$0xff] }
 0x25f   :  { %529 = vst [vmem:[#allocation1 + $0x2] ss:$9 sm:$0xff] %v454_v15  ;;  %802 = vmatpush.msrb.mxu2 %v721_v10  ;;  %v736_v15 = vld [vmem:[%s1649_s4 + $0xb0] sm:$0xff] }
 0x260   :  { %530 = vst [vmem:[#allocation1 + $0x3] ss:$9 sm:$0xff] %v456_v16  ;;  %858 = vmatpush.msrb.mxu3 %v749_v13  ;;  %v719_v16 = vld [vmem:[%s1649_s4 + $0x28] sm:$0xff]  ;;  %829 = vmatpush.msrb.mxu1 %v736_v15  ;;  %v698_v13 = vrot.slane %v1171_v44, 4  ;;  %v697_v15 = vrot.slane %v1160_v40, 4 }
 0x261   :  { %531 = vst [vmem:[#allocation1 + $0x4] ss:$9 sm:$0xff] %v458_v19  ;;  %803 = vmatpush.msrb.mxu2 %v720_v12 }
 0x262   :  { %532 = vst [vmem:[#allocation1 + $0x5] ss:$9 sm:$0xff] %v459_v43  ;;  %859 = vmatpush.msrb.mxu3 %v748_v38  ;;  %v699_v38 = vsel %vm693_vm12, %v697_v15, %v698_v13 }
 0x263   :  { %533 = vst [vmem:[#allocation1 + $0x6] ss:$9 sm:$0xff] %v461_v20  ;;  %v735_v20 = vld [vmem:[%s1649_s4 + $0xa8] sm:$0xff]  ;;  %804 = vmatpush.msrb.mxu2 %v719_v16 }
 0x264   :  { %534 = vst [vmem:[#allocation1 + $0x7] ss:$9 sm:$0xff] %v463_v21  ;;  %860 = vmatpush.msrb.mxu3 %v747_v18  ;;  %830 = vmatpush.msrb.mxu1 %v735_v20  ;;  %v706_v18 = vrot.slane %v1262_v33, 4  ;;  %v711_v33 = vrot.slane %v1300_v0, 4 }
 0x265   :  { %805 = vmatpush.msrb.mxu2 %v718_v22 }
 0x266   :  { %861 = vmatpush.msrb.mxu3 %v746_v24 }
 0x26b   :  { %v535_v29 = vld [vmem:[#allocation1] sm:$0xff]  ;;  %v536_v31 = vld [vmem:[#allocation1 + $0x9] sm:$0xff] }
 0x26c   :  { %537 = vst [vmem:[#allocation1] ss:$9 sm:$0xff] %v465_v25  ;;  %571 = vmatmul.f32.gmra.mxu3 %v535_v29  ;;  %600 = vmatmul.f32.gmra.mxu0 %v536_v31  ;;  %v734_v25 = vld [vmem:[%s1649_s4 + $0xa0] sm:$0xff] }
 0x26d   :  { %538 = vst [vmem:[#allocation1 + $0x1] ss:$9 sm:$0xff] %v467_v28  ;;  %831 = vmatpush.msrb.mxu1 %v734_v25 }
 0x26f   :  { %832 = vmatpush.msrb.mxu1 %v733_v26 }
 0x271   :  { %833 = vmatpush.msrb.mxu1 %v732_v45 }
 0x273   :  { %834 = vmatpush.msrb.mxu1 %v731_v52 }
 0x274   :  { %v539_v35 = vld [vmem:[#allocation1] sm:$0xff]  ;;  %v540_v36 = vld [vmem:[#allocation1 + $0x9] sm:$0xff] }
 0x275   :  { %574 = vmatmul.f32.gmra.mxu3 %v539_v35  ;;  %603 = vmatmul.f32.gmra.mxu0 %v540_v36  ;;  %v717_v35 = vld [vmem:[%s1649_s4 + $0x18] sm:$0xff] }
 0x276   :  { %806 = vmatpush.msrb.mxu2 %v717_v35 }
 0x278   :  { %807 = vmatpush.msrb.mxu2 %v716_v42 }
 0x2cb   :  { %v595_v46 = vpop.f32.mrf.mxu0 }
 0x2d1   :  { %v566_v47 = vpop.f32.mrf.mxu3 }
 0x2d2   :  { %v596_v4 = vadd.f32 %v595_v46, %v566_v47  ;;  %v715_v46 = vld [vmem:[%s1649_s4 + $0x8] sm:$0xff] }
 0x2d3   :  { %808 = vmatpush.msrb.mxu2 %v715_v46 }
 0x2d4   :  { %v611_v55 = vrot.slane %v596_v4, 1  ;;  %v613_v1 = vrot.slane %v596_v4, 3  ;;  %v614_v56 = vrot.slane %v596_v4, 4  ;;  %633 = vst [vmem:[#allocation1] ss:$9 sm:$0xff] %v596_v4  ;;  %v612_v57 = vrot.slane %v596_v4, 2 }
 0x2d5   :  { %v615_v61 = vrot.slane %v596_v4, 5  ;;  %v616_v2 = vrot.slane %v596_v4, 6  ;;  %v617_v6 = vrot.slane %v596_v4, 7 }
 0x2d6   :  { %639 = vst [vmem:[#allocation1 + $0x3] ss:$9 sm:$0xff] %v613_v1  ;;  %v730_v1 = vld [vmem:[%s1649_s4 + $0x80] sm:$0xff] }
 0x2d7   :  { %641 = vst [vmem:[#allocation1 + $0x4] ss:$9 sm:$0xff] %v614_v56  ;;  %835 = vmatpush.msrb.mxu1 %v730_v1 }
 0x2d8   :  { %635 = vst [vmem:[#allocation1 + $0x1] ss:$9 sm:$0xff] %v611_v55  ;;  %v714_v55 = vld [vmem:[%s1649_s4] sm:$0xff]  ;;  %s1046_s4 = smov 8  }
 0x2d9   :  { %637 = vst [vmem:[#allocation1 + $0x2] ss:$9 sm:$0xff] %v612_v57  ;;  %809 = vmatpush.msrb.mxu2 %v714_v55 }
 0x2da   :  { %643 = vst [vmem:[#allocation1 + $0x5] ss:$9 sm:$0xff] %v615_v61  ;;  %v598_v19 = vpop.f32.mrf.mxu0 }
 0x2db   :  { %645 = vst [vmem:[#allocation1 + $0x6] ss:$9 sm:$0xff] %v616_v2  ;;  %v695_v2 = vrot.slane %v1134_v27, 4 }
 0x2dc   :  { %647 = vst [vmem:[#allocation1 + $0x7] ss:$9 sm:$0xff] %v617_v6 }
 0x2dd   :  { %v696_v11 = vsel %vm693_vm12, %v694_v30, %v695_v2 }
 0x2de   :  { %v707_v27 = vrot.slane %v696_v11, 4 }
 0x2e0   :  { %v569_v43 = vpop.f32.mrf.mxu3 }
 0x2e1   :  { %v599_v21 = vadd.f32 %v598_v19, %v569_v43  ;;  %v712_v43 = vrot.slane %v699_v38, 4 }
 0x2e3   :  { %v618_v28 = vrot.slane %v599_v21, 1  ;;  %v619_v29 = vrot.slane %v599_v21, 2  ;;  %v620_v31 = vrot.slane %v599_v21, 3  ;;  %v648_v36 = vld [vmem:[#allocation1] sm:$0xff]  ;;  %v621_v37 = vrot.slane %v599_v21, 4 }
 0x2e4   :  { %649 = vst [vmem:[#allocation1] ss:$9 sm:$0xff] %v599_v21  ;;  %v622_v39 = vrot.slane %v599_v21, 5  ;;  %v623_v47 = vrot.slane %v599_v21, 6  ;;  %v624_v53 = vrot.slane %v599_v21, 7  ;;  %v674_v10 = vsel %vm358_vm5, %v648_v36, -inf }
 0x2e5   :  { %650 = vst [vmem:[#allocation1 + $0x1] ss:$9 sm:$0xff] %v618_v28 }
 0x2e6   :  { %651 = vst [vmem:[#allocation1 + $0x2] ss:$9 sm:$0xff] %v619_v29 }
 0x2e7   :  { %652 = vst [vmem:[#allocation1 + $0x3] ss:$9 sm:$0xff] %v620_v31 }
 0x2e8   :  { %653 = vst [vmem:[#allocation1 + $0x4] ss:$9 sm:$0xff] %v621_v37 }
 0x2e9   :  { %v601_v48 = vpop.f32.mrf.mxu0 }
 0x2ef   :  { %v572_v51 = vpop.f32.mrf.mxu3  ;;  %v654_v4 = vld [vmem:[#allocation1] sm:$0xff] }
 0x2f0   :  { %v602_v54 = vadd.f32 %v601_v48, %v572_v51  ;;  %655 = vst [vmem:[#allocation1] ss:$9 sm:$0xff] %v622_v39  ;;  %v676_v6 = vsel %vm675_vm4, %v654_v4, -inf }
 0x2f1   :  { %656 = vst [vmem:[#allocation1 + $0x1] ss:$9 sm:$0xff] %v623_v47  ;;  %v677_v12 = vmax.f32 %v674_v10, %v676_v6 }
 0x2f2   :  { %v625_v56 = vrot.slane %v602_v54, 1  ;;  %v626_v57 = vrot.slane %v602_v54, 2  ;;  %v627_v58 = vrot.slane %v602_v54, 3  ;;  %657 = vst [vmem:[#allocation1 + $0x2] ss:$9 sm:$0xff] %v624_v53  ;;  %v628_v59 = vrot.slane %v602_v54, 4  ;;  %v604_v61 = vpop.f32.mrf.mxu0 }
 0x2f3   :  { %658 = vst [vmem:[#allocation1 + $0x3] ss:$9 sm:$0xff] %v602_v54  ;;  %v629_v5 = vrot.slane %v602_v54, 5  ;;  %v630_v7 = vrot.slane %v602_v54, 6  ;;  %v631_v63 = vrot.slane %v602_v54, 7  ;;  %v678_v23 = vrot.slane %v677_v12, 4 }
 0x2f4   :  { %659 = vst [vmem:[#allocation1 + $0x4] ss:$9 sm:$0xff] %v625_v56 }
 0x2f5   :  { %660 = vst [vmem:[#allocation1 + $0x5] ss:$9 sm:$0xff] %v626_v57  ;;  %v679_v16 = vmax.f32 %v677_v12, %v678_v23 }
 0x2f6   :  { %661 = vst [vmem:[#allocation1 + $0x6] ss:$9 sm:$0xff] %v627_v58 }
 0x2f7   :  { %662 = vst [vmem:[#allocation1 + $0x7] ss:$9 sm:$0xff] %v628_v59  ;;  %v943_v59 = vld [vmem:[%s1651_s6 + $0x10] sm:$0xff] }
 0x2f8   :  { %v575_v49 = vpop.f32.mrf.mxu3  ;;  %965 = vmatpush.msra.mxu2 %v943_v59 }
 0x2f9   :  { %v605_v14 = vadd.f32 %v604_v61, %v575_v49  ;;  %v942_v49 = vld [vmem:[%s1651_s6 + $0x8] sm:$0xff] }
 0x2fa   :  { %966 = vmatpush.msra.mxu2 %v942_v49 }
 0x2fb   :  { %v632_v9 = vrot.slane %v605_v14, 1 }
 0x2fe   :  { %v663_v8 = vld [vmem:[#allocation1] sm:$0xff] }
 0x2ff   :  { %664 = vst [vmem:[#allocation1] ss:$9 sm:$0xff] %v629_v5  ;;  %v684_v44 = vsel %vm358_vm5, %v663_v8, -inf  ;;  %v941_v5 = vld [vmem:[%s1651_s6] sm:$0xff]  ;;  %s1047_s6 = smov 16  }
 0x300   :  { %665 = vst [vmem:[#allocation1 + $0x1] ss:$9 sm:$0xff] %v630_v7  ;;  %967 = vmatpush.msra.mxu2 %v941_v5 }
 0x301   :  { %666 = vst [vmem:[#allocation1 + $0x2] ss:$9 sm:$0xff] %v631_v63 }
 0x302   :  { %667 = vst [vmem:[#allocation1 + $0x3] ss:$9 sm:$0xff] %v605_v14 }
 0x303   :  { %668 = vst [vmem:[#allocation1 + $0x4] ss:$9 sm:$0xff] %v632_v9 }
 0x304   :  { %758 = vst [vmem:[#allocation1 + $0x10] ss:$2 sm:$0xff] %v696_v11 }
 0x305   :  { %760 = vst [vmem:[#allocation1 + $0x11] ss:$2 sm:$0xff] %v707_v27 }
 0x306   :  { %762 = vst [vmem:[#allocation1 + $0x20] ss:$2 sm:$0xff] %v1310_v3  ;;  %v680_v3 = vrot.slane %v679_v16, 2 }
 0x307   :  { %764 = vst [vmem:[#allocation1 + $0x21] ss:$2 sm:$0xff] %v1296_v60 }
 0x308   :  { %766 = vst [vmem:[#allocation1 + $0x30] ss:$2 sm:$0xff] %v695_v2  ;;  %v681_v22 = vmax.f32 %v679_v16, %v680_v3 }
 0x309   :  { %768 = vst [vmem:[#allocation1 + $0x31] ss:$2 sm:$0xff] %v699_v38 }
 0x30a   :  { %v669_v19 = vld [vmem:[#allocation1] sm:$0xff]  ;;  %v682_v31 = vrot.slane %v681_v22, 1 }
 0x30b   :  { %754 = vst [vmem:[#allocation1] ss:$2 sm:$0xff] %v1258_v32  ;;  %v685_v20 = vsel %vm675_vm4, %v669_v19, -inf }
 0x30c   :  { %v771_v40 = vld.sshfl [vmem:[#allocation1 + $0x10] sm:$0xff pattern:$0x75316420]  ;;  %756 = vst [vmem:[#allocation1 + $0x1] ss:$2 sm:$0xff] %v706_v18  ;;  %v686_v21 = vmax.f32 %v684_v44, %v685_v20  ;;  %v683_v37 = vmax.f32 %v681_v22, %v682_v31 }
 0x30d   :  { %777 = vst [vmem:[#allocation1 + $0x10] ss:$2 sm:$0xff] %v712_v43  ;;  %1003 = vmatmul.msk.f32.vlgmr.msrb.gmra.mxu3 %vm154_vm9, %v771_v40 }
 0x30e   :  { %778 = vst [vmem:[#allocation1 + $0x11] ss:$2 sm:$0xff] %v698_v13  ;;  %v687_v60 = vrot.slane %v686_v21, 4  ;;  %v772_v42 = vld.sshfl [vmem:[#allocation1 + $0x20] sm:$0xff pattern:$0x75316420] }
 0x30f   :  { %v773_v0 = vld.sshfl [vmem:[#allocation1 + $0x28] sm:$0xff pattern:$0x75316420] }
 0x310   :  { %v688_v24 = vmax.f32 %v686_v21, %v687_v60  ;;  %v774_v29 = vld.sshfl [vmem:[#allocation1 + $0x30] sm:$0xff pattern:$0x75316420] }
 0x312   :  { %v689_v25 = vrot.slane %v688_v24, 2 }
 0x313   :  { %v769_v28 = vld.sshfl [vmem:[#allocation1] sm:$0xff pattern:$0x75316420]  ;;  %v770_v32 = vld.sshfl [vmem:[#allocation1 + $0x8] sm:$0xff pattern:$0x75316420] }
 0x314   :  { %810 = vmatmul.f32.vlgmr.msrb.gmra.mxu2 %v769_v28  ;;  %836 = vmatmul.f32.vlgmr.msrb.gmra.mxu1 %v770_v32  ;;  %775 = vst [vmem:[#allocation1] ss:$2 sm:$0xff] %v711_v33  ;;  %v690_v35 = vmax.f32 %v688_v24, %v689_v25  ;;  %v370_v33 = vsel %vm360_vm7, %v1429_v34, -inf  ;;  %v361_v25 = vsel %vm360_vm7, %v1377_v62, -inf  ;;  %v369_v28 = vsel %vm358_vm5, %v1405_v17, -inf }
 0x315   :  { %776 = vst [vmem:[#allocation1 + $0x1] ss:$2 sm:$0xff] %v1287_v50  ;;  %1004 = vmatmul.msk.f32.gmra.mxu3 %vm154_vm9, %v774_v29  ;;  %v781_v45 = vld.sshfl [vmem:[#allocation1 + $0x10] sm:$0xff pattern:$0x75316420]  ;;  %v371_v32 = vmax.f32 %v369_v28, %v370_v33  ;;  %v359_v29 = vsel %vm358_vm5, %v1350_v41, -inf }
 0x316   :  { %v691_v36 = vrot.slane %v690_v35, 1  ;;  %v362_v31 = vmax.f32 %v359_v29, %v361_v25  ;;  %v1016_v17 = vld [vmem:[%s1650_s5] ss:$0 sm:$0xff]  ;;  %s981_s5 = sshll.u32 %s1653_s8, 4  ;;  %s982_s5 = int_to_ptr.hbm [resolvable:$true] %s981_s5 }
 0x318   :  { %v692_v26 = vmax.f32 %v690_v35, %v691_v36  ;;  %v372_v35 = vrot.slane %v371_v32, 4  ;;  %v363_v36 = vrot.slane %v362_v31, 4 }
 0x31a   :  { %v922_v39 = vsel %vm415_vm14, %v692_v26, %v683_v37  ;;  %v373_v37 = vmax.f32 %v371_v32, %v372_v35  ;;  %v364_v26 = vmax.f32 %v362_v31, %v363_v36 }
 0x31b   :  { %923 = vrot.lane.b32.xlu1 %v922_v39, %s1046_s4 }
 0x31c   :  { %813 = vmatmul.f32.gmra.mxu2 %v772_v42  ;;  %839 = vmatmul.f32.gmra.mxu1 %v773_v0  ;;  %v779_v46 = vld.sshfl [vmem:[#allocation1] sm:$0xff pattern:$0x75316420]  ;;  %v780_v47 = vld.sshfl [vmem:[#allocation1 + $0x8] sm:$0xff pattern:$0x75316420] }
 0x31d   :  { %1005 = vmatmul.msk.f32.gmra.mxu3 %vm154_vm9, %v781_v45  ;;  %v374_v39 = vrot.slane %v373_v37, 2  ;;  %v365_v42 = vrot.slane %v364_v26, 2  ;;  %vm948_vm9 = vcmask 195584  }
 0x31f   :  { %v375_v0 = vmax.f32 %v373_v37, %v374_v39  ;;  %v366_v45 = vmax.f32 %v364_v26, %v365_v42 }
 0x321   :  { %v367_v34 = vrot.slane %v366_v45, 1 }
 0x323   :  { %v368_v62 = vmax.f32 %v366_v45, %v367_v34 }
 0x324   :  { %816 = vmatmul.f32.gmra.mxu2 %v779_v46  ;;  %842 = vmatmul.f32.gmra.mxu1 %v780_v47  ;;  %v376_v46 = vrot.slane %v375_v0, 1 }
 0x326   :  { %v377_v47 = vmax.f32 %v375_v0, %v376_v46 }
 0x328   :  { %v918_v41 = vsel %vm415_vm14, %v377_v47, %v368_v62 }
 0x390   :  { %v863_v48 = vpop.f32.mrf.mxu3 }
 0x391   :  { %v837_v50 = vpop.f32.mrf.mxu1 }
 0x397   :  { %v811_v51 = vpop.f32.mrf.mxu2 }
 0x398   :  { %v838_v4 = vadd.f32 %v837_v50, %v811_v51  ;;  %v866_v55 = vpop.f32.mrf.mxu3  ;;  %v924_v50 = vpop.permute.xlu1 %923 }
 0x399   :  { %v840_v54 = vpop.f32.mrf.mxu1 }
 0x39a   :  { %v864_v52 = vadd.f32 %v863_v48, %v838_v4  ;;  %v932_v48 = vsel %vm358_vm5, %v918_v41, %v924_v50 }
 0x39c   :  { %v875_v53 = vrot.slane %v864_v52, 4  ;;  %878 = vst [vmem:[#allocation1] ss:$2 sm:$0xff] %v864_v52 }
 0x39e   :  { %880 = vst [vmem:[#allocation1 + $0x1] ss:$2 sm:$0xff] %v875_v53 }
 0x39f   :  { %v814_v1 = vpop.f32.mrf.mxu2 }
 0x3a0   :  { %v841_v56 = vadd.f32 %v840_v54, %v814_v1  ;;  %v869_v6 = vpop.f32.mrf.mxu3  ;;  %v1017_v54 = vld [vmem:[%s1652_s7] ss:$0 sm:$0xff] }
 0x3a1   :  { %v843_v61 = vpop.f32.mrf.mxu1 }
 0x3a2   :  { %v867_v57 = vadd.f32 %v866_v55, %v841_v56 }
 0x3a4   :  { %v876_v58 = vrot.slane %v867_v57, 4  ;;  %882 = vst [vmem:[#allocation1 + $0x10] ss:$2 sm:$0xff] %v867_v57 }
 0x3a5   :  { %v883_v30 = vld.sshfl [vmem:[#allocation1] sm:$0xff pattern:$0x75316420] }
 0x3a6   :  { %886 = vst [vmem:[#allocation1 + $0x20] ss:$2 sm:$0xff] %v876_v58  ;;  %v897_v9 = vsel %vm358_vm5, %v883_v30, -inf }
 0x3a7   :  { %v817_v14 = vpop.f32.mrf.mxu2 }
 0x3a8   :  { %v844_v2 = vadd.f32 %v843_v61, %v817_v14 }
 0x3aa   :  { %v870_v7 = vadd.f32 %v869_v6, %v844_v2 }
 0x3ab   :  { %v884_v8 = vld.sshfl [vmem:[#allocation1 + $0x10] sm:$0xff pattern:$0x75316420] }
 0x3ac   :  { %v877_v63 = vrot.slane %v870_v7, 4  ;;  %888 = vst [vmem:[#allocation1 + $0x21] ss:$2 sm:$0xff] %v870_v7  ;;  %v899_v10 = vsel %vm898_vm6, %v884_v8, -inf }
 0x3ad   :  { %v900_v11 = vmax.f32 %v897_v9, %v899_v10 }
 0x3ae   :  { %890 = vst [vmem:[#allocation1 + $0x30] ss:$2 sm:$0xff] %v877_v63 }
 0x3af   :  { %v901_v12 = vrot.slane %v900_v11, 4 }
 0x3b1   :  { %v902_v13 = vmax.f32 %v900_v11, %v901_v12 }
 0x3b3   :  { %v891_v27 = vld.sshfl [vmem:[#allocation1 + $0x20] sm:$0xff pattern:$0x75316420]  ;;  %v903_v16 = vrot.slane %v902_v13, 2 }
 0x3b4   :  { %v907_v15 = vsel %vm358_vm5, %v891_v27, -inf }
 0x3b5   :  { %v892_v23 = vld.sshfl [vmem:[#allocation1 + $0x30] sm:$0xff pattern:$0x75316420]  ;;  %v904_v43 = vmax.f32 %v902_v13, %v903_v16 }
 0x3b6   :  { %v908_v38 = vsel %vm898_vm6, %v892_v23, -inf }
 0x3b7   :  { %v909_v18 = vmax.f32 %v907_v15, %v908_v38  ;;  %v905_v40 = vrot.slane %v904_v43, 1 }
 0x3b9   :  { %v910_v19 = vrot.slane %v909_v18, 4  ;;  %v906_v60 = vmax.f32 %v904_v43, %v905_v40 }
 0x3bb   :  { %v911_v44 = vmax.f32 %v909_v18, %v910_v19 }
 0x3bd   :  { %v912_v20 = vrot.slane %v911_v44, 2 }
 0x3bf   :  { %v913_v3 = vmax.f32 %v911_v44, %v912_v20 }
 0x3c1   :  { %v914_v21 = vrot.slane %v913_v3, 1 }
 0x3c3   :  { %v915_v22 = vmax.f32 %v913_v3, %v914_v21 }
 0x3c5   :  { %v928_v24 = vsel %vm415_vm14, %v915_v22, %v906_v60 }
 0x3c6   :  { %929 = vrot.lane.b32.xlu2 %v928_v24, %s1047_s6 }
 0x420   :  { %v930_v51 = vpop.permute.xlu2 %929 }
 0x421   :  { %v934_v4 = vsel %vm933_vm8, %v932_v48, %v930_v51 }
 0x422   :  { %v939_v52 = vadd.f32 %v1016_v17, %v934_v4 }
 0x424   :  { %v940_v53 = vmax.f32 %v939_v52, 0.0 }
 0x426   :  { %1006 = vmatmul.msk.f32.vlgmr.msra.gmra.mxu2 %vm948_vm9, %v940_v53 }
 0x4a9   :  { %v969_v55 = vpop.f32.mrf.mxu2 }
 0x4aa   :  { %v970_v1 = vadd.f32 %v1017_v54, %v969_v55 }
 0x4ac   :  { %973 = vst.msk [vmem:[#allocation2] sm:$0x3] %vm972_vm10, %v970_v1 }
 0x4ad   :  { %984 = dma.vmem_to_hbm [thread:$0]  %s980_s20, 32, %s982_s5, [#allocation3]  }
 0x4ae   :  { %1042 = dma.done.wait [#allocation3], 32  }
 0x4af   :  { %1043 = vsyncadd [#allocation3], 4294967264 }
 0x4b0   :  { %989 = vsyncpa [#allocation3], 1 }

</bundles_post_ra>
